<compile_context>
chip_gen: v5e
topology: v5e:2x2
jax: 0.10.0
libtpu: 0.0.40
codegen_flags: <defaults>
</compile_context>

<pallas_src>
import functools

import jax
import jax.numpy as jnp
import numpy as np
from jax.experimental import pallas as pl
from jax.experimental.pallas import tpu as pltpu

_VMEM = pl.BlockSpec(memory_space=pltpu.MemorySpace.VMEM)

# Reference-only matmul (pure-JAX check path): f32 operands, highest precision.
_DOT_REF = functools.partial(jnp.dot, precision=jax.lax.Precision.HIGHEST,
                             preferred_element_type=jnp.float32)


def _bdot(a, b):
    """bf16-operand MXU matmul with f32 accumulation."""
    return jnp.dot(a.astype(jnp.bfloat16), b.astype(jnp.bfloat16),
                   preferred_element_type=jnp.float32)


# ------------------------------ Pallas kernel -------------------------------

def _cwn_fused_kernel(x_ref, we_ref, be_ref,
                      aurs_ref, aurc_ref, abrs_ref, degu_ref, degb_ref,
                      wcat_ref, bcat_ref, wh1_ref, wh2_ref,
                      o_ref):
    """Whole CWN forward (embed + all layers) in one kernel invocation.

    F is the (T, H) feature matrix over all cells (node | edge | cycle rows).
    Gather -> message-Linear -> scatter_add is purely linear, so it collapses
    exactly onto dense graph operators Aurs/Aurc/Abrs (T,T) and degree vectors
    degu/degb (T,1); every step is an MXU matmul and all intermediates stay in
    VMEM / vregs.
    """
    t = x_ref.shape[0]
    h = we_ref.shape[1]
    num_layers = wcat_ref.shape[0]

    # Shared embed Linear applied to all cell rows at once.
    f = _bdot(x_ref[...], we_ref[...]) + be_ref[...]

    aurs = aurs_ref[...]
    aurc = aurc_ref[...]
    abrs = abrs_ref[...]
    # Hoisted lane broadcasts (not CSE'd across the unrolled layer loop).
    degu = jnp.broadcast_to(degu_ref[...], (t, h))
    degb = jnp.broadcast_to(degb_ref[...], (t, h))

    # TODO(synk): lax.fori_loop with dynamic wcat_ref[l] indexing for deep stacks.
    for l in range(num_layers):
        # Fused projection: F @ [Wu_r|Wu_s|Wu_c|Wb_r|Wb_s|Wh_r] + fused biases.
        p = _bdot(f, wcat_ref[l]) + bcat_ref[l]
        pu_r, pu_s, pu_c = p[:, 0:h], p[:, h:2 * h], p[:, 2 * h:3 * h]
        pb_r, pb_s = p[:, 3 * h:4 * h], p[:, 4 * h:5 * h]
        ph_r = p[:, 5 * h:6 * h]

        # Upper-adjacency messages (node & edge level share Wu); scatter_add
        # folded into degu / Aurs / Aurc.  Cycle rows stay zero.
        u = degu * pu_r + _bdot(aurs, pu_s) + _bdot(aurc, pu_c)
        # Boundary messages (edge & cycle level share Wb); scatter_add folded
        # into degb / Abrs.  Node rows stay zero.
        b = degb * pb_r + _bdot(abrs, pb_s)
        # h_update over the column concat [F | B | U] as three block matmuls.
        f = ph_r + _bdot(b, wh1_ref[l]) + _bdot(u, wh2_ref[l])

    o_ref[...] = f


# --------------------------- one-time preparation ---------------------------

def build_graph_operators(counts, boundary_index, upper_adj_index):
    """Dense message-passing operators over the global cell-row space.

    Row layout: nodes [0, n0), edges [n0, n0+n1), cycles [n0+n1, T).  Built
    once per static graph.  Out-of-range receiver indices give all-zero
    one-hot rows, i.e. dropped messages — matching scatter_add semantics.
    """
    n0, n1, n2 = counts
    t = n0 + n1 + n2
    oh = lambda idx, off: jax.nn.one_hot(idx + off, t, dtype=jnp.float32)

    (u0r, u0s, u0c) = upper_adj_index[0]      # nodes  <- (node, node, edge)
    (u1r, u1s, u1c) = upper_adj_index[1]      # edges  <- (edge, edge, cycle)
    r0, r1 = oh(u0r, 0), oh(u1r, n0)
    aurs = r0.T @ oh(u0s, 0) + r1.T @ oh(u1s, n0)
    aurc = r0.T @ oh(u0c, n0) + r1.T @ oh(u1c, n0 + n1)
    degu = (r0.sum(0) + r1.sum(0)).reshape(t, 1)

    (b0r, b0s) = boundary_index[0]            # edges  <- nodes
    (b1r, b1s) = boundary_index[1]            # cycles <- edges
    br0, br1 = oh(b0r, n0), oh(b1r, n0 + n1)
    abrs = br0.T @ oh(b0s, 0) + br1.T @ oh(b1s, n0)
    degb = (br0.sum(0) + br1.sum(0)).reshape(t, 1)

    # Small integer counts -> exact in bf16; halves the O(T^2) VMEM term.
    return (aurs.astype(jnp.bfloat16), aurc.astype(jnp.bfloat16),
            abrs.astype(jnp.bfloat16), degu, degb)


def prepare_params(params):
    """Re-pack nn.Linear weights into the fused / stacked kernel layout (once)."""
    we, be = params["embed"]
    h = we.shape[1]
    zero = jnp.zeros((h,), jnp.float32)
    wcat, bcat, wh1, wh2 = [], [], [], []
    for lp in params["layers"]:
        wb, bb = lp["boundary"]       # (2h, h), (h,)
        wu, bu = lp["upper"]          # (3h, h), (h,)
        wh, bh = lp["h_update"]       # (3h, h), (h,)
        wcat.append(jnp.concatenate(
            [wu[:h], wu[h:2 * h], wu[2 * h:], wb[:h], wb[h:], wh[:h]], axis=1))
        bcat.append(jnp.concatenate([bu, zero, zero, bb, zero, bh]).reshape(1, 6 * h))
        wh1.append(wh[h:2 * h])       # multiplies boundary messages B
        wh2.append(wh[2 * h:])        # multiplies upper messages U
    return {
        "we": we.astype(jnp.bfloat16),
        "be": be.reshape(1, h).astype(jnp.float32),
        "wcat": jnp.stack(wcat).astype(jnp.bfloat16),   # (L, h, 6h)
        "bcat": jnp.stack(bcat).astype(jnp.float32),    # (L, 1, 6h)
        "wh1": jnp.stack(wh1).astype(jnp.bfloat16),     # (L, h, h)
        "wh2": jnp.stack(wh2).astype(jnp.bfloat16),     # (L, h, h)
    }


# --------------------------------- wrapper -----------------------------------

def make_cwn_forward(counts, num_hidden):
    """Return forward(prepped_params, graph_ops, cell_features) -> (T, H)."""
    n0, n1, n2 = counts
    t = n0 + n1 + n2
    h = num_hidden

    def forward(prepped, graph_ops, cell_features):
        aurs, aurc, abrs, degu, degb = graph_ops
        x = cell_features.astype(jnp.bfloat16)
        inputs = (x, prepped["we"], prepped["be"],
                  aurs, aurc, abrs, degu, degb,
                  prepped["wcat"], prepped["bcat"], prepped["wh1"], prepped["wh2"])

        c = x.shape[1]
        num_layers = prepped["wcat"].shape[0]
        flops = (2 * t * c * h
                 + num_layers * (2 * t * h * 6 * h          # fused projection
                                 + 3 * 2 * t * t * h        # operator matmuls
                                 + 2 * 2 * t * h * h))      # h_update blocks
        bytes_accessed = (sum(int(a.size) * int(a.dtype.itemsize) for a in inputs)
                          + t * h * 4)

        # TODO(synk): at real graph sizes add a row-tiled grid (parallel row
        # axis for v7x's 2 TCs) and stream (tm, T) operator slabs via BlockSpec.
        return pl.pallas_call(
            _cwn_fused_kernel,
            out_shape=jax.ShapeDtypeStruct((t, h), jnp.float32),
            in_specs=[_VMEM] * len(inputs),
            out_specs=_VMEM,
            compiler_params=pltpu.CompilerParams(
                vmem_limit_bytes=48 * 1024 * 1024),
            cost_estimate=pl.CostEstimate(
                flops=flops, transcendentals=0, bytes_accessed=bytes_accessed),
        )(*inputs)

    return forward


# ----------------------- pure-JAX reference (for check) ---------------------

def cwn_reference(params, cell_features, counts, boundary_index, upper_adj_index):
    """Faithful gather -> Linear -> scatter_add mirror of the PyTorch module."""
    n0, n1, n2 = counts
    we, be = params["embed"]
    h = we.shape[1]
    x = cell_features.astype(jnp.float32)
    node = _DOT_REF(x[:n0], we) + be
    edge = _DOT_REF(x[n0:n0 + n1], we) + be
    cyc = _DOT_REF(x[n0 + n1:], we) + be
    for lp in params["layers"]:
        wb, bb = lp["boundary"]
        wu, bu = lp["upper"]
        wh, bh = lp["h_update"]

        rec, send, com = upper_adj_index[0]
        m = _DOT_REF(jnp.concatenate([node[rec], node[send], edge[com]], 1), wu) + bu
        node_upper = jax.ops.segment_sum(m, rec, num_segments=n0)
        node_msgs = jnp.concatenate(
            [node, jnp.zeros((n0, h), jnp.float32), node_upper], 1)

        rec, send = boundary_index[0]
        m = _DOT_REF(jnp.concatenate([edge[rec], node[send]], 1), wb) + bb
        edge_b = jax.ops.segment_sum(m, rec, num_segments=n1)
        rec, send, com = upper_adj_index[1]
        m = _DOT_REF(jnp.concatenate([edge[rec], edge[send], cyc[com]], 1), wu) + bu
        edge_u = jax.ops.segment_sum(m, rec, num_segments=n1)
        edge_msgs = jnp.concatenate([edge, edge_b, edge_u], 1)

        rec, send = boundary_index[1]
        m = _DOT_REF(jnp.concatenate([cyc[rec], edge[send]], 1), wb) + bb
        cyc_b = jax.ops.segment_sum(m, rec, num_segments=n2)
        cyc_msgs = jnp.concatenate(
            [cyc, cyc_b, jnp.zeros((n2, h), jnp.float32)], 1)

        upd = _DOT_REF(jnp.concatenate([node_msgs, edge_msgs, cyc_msgs], 0), wh) + bh
        node, edge, cyc = upd[:n0], upd[n0:n0 + n1], upd[n0 + n1:]
    return jnp.concatenate([node, edge, cyc], 0)


# ------------------------------- parameters ---------------------------------

def init_params(key, num_cells, num_hidden, num_layers):
    """Deterministic init mimicking nn.Linear default (uniform +-1/sqrt(fan_in))."""
    def lin(key, fan_in, fan_out):
        k1, k2 = jax.random.split(key)
        bound = 1.0 / np.sqrt(fan_in)
        w = jax.random.uniform(k1, (fan_in, fan_out), jnp.float32, -bound, bound)
        b = jax.random.uniform(k2, (fan_out,), jnp.float32, -bound, bound)
        return w, b

    keys = jax.random.split(key, 1 + num_layers)
    params = {"embed": lin(keys[0], num_cells, num_hidden), "layers": []}
    for i in range(num_layers):
        k1, k2, k3 = jax.random.split(keys[1 + i], 3)
        params["layers"].append({
            "boundary": lin(k1, 2 * num_hidden, num_hidden),
            "upper": lin(k2, 3 * num_hidden, num_hidden),
            "h_update": lin(k3, 3 * num_hidden, num_hidden),
        })
    return params


# ---------------------------------- driver ----------------------------------

if __name__ == "__main__":
    num_cells = 12    # raw input feature dim (embed fan-in)
    num_hidden = 32
    num_layers = 2

    n0, n1, n2 = 6, 8, 3          # nodes, edges, cycles
    counts = (n0, n1, n2)
    total = n0 + n1 + n2

    key = jax.random.PRNGKey(0)
    k_feat, k_param, k1, k2, k3, k4, k5, k6 = jax.random.split(key, 8)

    cell_features = jax.random.normal(k_feat, (total, num_cells), jnp.float32)
    # cell_dim_batch (sorted by dimension) — its row split is carried by `counts`
    cell_dim_batch = jnp.array([0] * n0 + [1] * n1 + [2] * n2, jnp.int32)

    # boundary_index[0]: edges <- nodes (2 boundary nodes per edge)
    bi0_rec = jnp.repeat(jnp.arange(n1, dtype=jnp.int32), 2)
    bi0_send = jax.random.randint(k1, (2 * n1,), 0, n0, jnp.int32)
    # boundary_index[1]: cycles <- edges (3 boundary edges per cycle)
    bi1_rec = jnp.repeat(jnp.arange(n2, dtype=jnp.int32), 3)
    bi1_send = jax.random.randint(k2, (3 * n2,), 0, n1, jnp.int32)
    boundary_index = [(bi0_rec, bi0_send), (bi1_rec, bi1_send)]

    # upper_adj_index[0]: node-node pairs sharing an edge
    ua0_rec = jax.random.randint(k3, (2 * n1,), 0, n0, jnp.int32)
    ua0_send = jax.random.randint(k4, (2 * n1,), 0, n0, jnp.int32)
    ua0_common = jnp.repeat(jnp.arange(n1, dtype=jnp.int32), 2)
    # upper_adj_index[1]: edge-edge pairs sharing a cycle
    ua1_rec = jax.random.randint(k5, (4 * n2,), 0, n1, jnp.int32)
    ua1_send = jax.random.randint(k6, (4 * n2,), 0, n1, jnp.int32)
    ua1_common = jnp.repeat(jnp.arange(n2, dtype=jnp.int32), 4)
    upper_adj_index = [(ua0_rec, ua0_send, ua0_common),
                       (ua1_rec, ua1_send, ua1_common)]

    params = init_params(k_param, num_cells, num_hidden, num_layers)

    # One-time preparation (hoisted out of the jitted per-call forward).
    prepped = prepare_params(params)
    graph_ops = build_graph_operators(counts, boundary_index, upper_adj_index)

    fwd = jax.jit(make_cwn_forward(counts, num_hidden))
    out = jax.block_until_ready(fwd(prepped, graph_ops, cell_features))

    ref = jax.block_until_ready(
        cwn_reference(params, cell_features, counts, boundary_index,
                      upper_adj_index))

    assert out.shape == (total, num_hidden)
    # bf16 MXU operands (f32 accumulation) vs. an f32 HIGHEST-precision
    # reference -> tolerance loosened accordingly (semantic errors would be O(1)).
    np.testing.assert_allclose(np.asarray(out), np.asarray(ref),
                               rtol=5e-2, atol=1e-1)

    print("KERNEL_OK")
</pallas_src>

<mosaic_0001>
module attributes {stable_mosaic.version = 11 : i64} {
  func.func @_cwn_fused_kernel(%arg0: memref<17x12xbf16, #tpu.memory_space<vmem>>, %arg1: memref<12x32xbf16, #tpu.memory_space<vmem>>, %arg2: memref<1x32xf32, #tpu.memory_space<vmem>>, %arg3: memref<17x17xbf16, #tpu.memory_space<vmem>>, %arg4: memref<17x17xbf16, #tpu.memory_space<vmem>>, %arg5: memref<17x17xbf16, #tpu.memory_space<vmem>>, %arg6: memref<17x1xf32, #tpu.memory_space<vmem>>, %arg7: memref<17x1xf32, #tpu.memory_space<vmem>>, %arg8: memref<2x32x192xbf16, #tpu.memory_space<vmem>>, %arg9: memref<2x1x192xf32, #tpu.memory_space<vmem>>, %arg10: memref<2x32x32xbf16, #tpu.memory_space<vmem>>, %arg11: memref<2x32x32xbf16, #tpu.memory_space<vmem>>, %arg12: memref<17x32xf32, #tpu.memory_space<vmem>>) attributes {dimension_semantics = [], scalar_prefetch = 0 : i64, scratch_operands = 0 : i64, tpu.core_type = #tpu.core_type<tc>} {
    %c0 = arith.constant 0 : index
    %c0_0 = arith.constant 0 : index
    %0 = vector.load %arg0[%c0, %c0_0] : memref<17x12xbf16, #tpu.memory_space<vmem>>, vector<17x12xbf16>
    %c0_1 = arith.constant 0 : index
    %c0_2 = arith.constant 0 : index
    %1 = vector.load %arg1[%c0_1, %c0_2] : memref<12x32xbf16, #tpu.memory_space<vmem>>, vector<12x32xbf16>
    %cst = arith.constant dense<0.000000e+00> : vector<17x32xf32>
    %2 = tpu.matmul %0, %1, %cst {dimension_numbers = #tpu.dot_dimension_numbers<[1], [0], [0], [1], [0, 0, 1, 1], [], []>} : vector<17x12xbf16>, vector<12x32xbf16>, vector<17x32xf32> -> vector<17x32xf32>
    %c0_3 = arith.constant 0 : index
    %c0_4 = arith.constant 0 : index
    %3 = vector.load %arg2[%c0_3, %c0_4] : memref<1x32xf32, #tpu.memory_space<vmem>>, vector<1x32xf32>
    %4 = vector.broadcast %3 : vector<1x32xf32> to vector<17x32xf32>
    %5 = arith.addf %2, %4 : vector<17x32xf32>
    %c0_5 = arith.constant 0 : index
    %c0_6 = arith.constant 0 : index
    %6 = vector.load %arg3[%c0_5, %c0_6] : memref<17x17xbf16, #tpu.memory_space<vmem>>, vector<17x17xbf16>
    %c0_7 = arith.constant 0 : index
    %c0_8 = arith.constant 0 : index
    %7 = vector.load %arg4[%c0_7, %c0_8] : memref<17x17xbf16, #tpu.memory_space<vmem>>, vector<17x17xbf16>
    %c0_9 = arith.constant 0 : index
    %c0_10 = arith.constant 0 : index
    %8 = vector.load %arg5[%c0_9, %c0_10] : memref<17x17xbf16, #tpu.memory_space<vmem>>, vector<17x17xbf16>
    %c0_11 = arith.constant 0 : index
    %c0_12 = arith.constant 0 : index
    %9 = vector.load %arg6[%c0_11, %c0_12] : memref<17x1xf32, #tpu.memory_space<vmem>>, vector<17x1xf32>
    %10 = vector.shape_cast %9 : vector<17x1xf32> to vector<17x1xf32>
    %11 = vector.broadcast %10 : vector<17x1xf32> to vector<17x32xf32>
    %c0_13 = arith.constant 0 : index
    %c0_14 = arith.constant 0 : index
    %12 = vector.load %arg7[%c0_13, %c0_14] : memref<17x1xf32, #tpu.memory_space<vmem>>, vector<17x1xf32>
    %13 = vector.shape_cast %12 : vector<17x1xf32> to vector<17x1xf32>
    %14 = vector.broadcast %13 : vector<17x1xf32> to vector<17x32xf32>
    %c0_15 = arith.constant 0 : index
    %c0_16 = arith.constant 0 : index
    %c0_17 = arith.constant 0 : index
    %15 = vector.load %arg8[%c0_15, %c0_16, %c0_17] : memref<2x32x192xbf16, #tpu.memory_space<vmem>>, vector<1x32x192xbf16>
    %16 = vector.shape_cast %15 : vector<1x32x192xbf16> to vector<32x192xbf16>
    %17 = arith.truncf %5 : vector<17x32xf32> to vector<17x32xbf16>
    %cst_18 = arith.constant dense<0.000000e+00> : vector<17x192xf32>
    %18 = tpu.matmul %17, %16, %cst_18 {dimension_numbers = #tpu.dot_dimension_numbers<[1], [0], [0], [1], [0, 0, 1, 1], [], []>} : vector<17x32xbf16>, vector<32x192xbf16>, vector<17x192xf32> -> vector<17x192xf32>
    %c0_19 = arith.constant 0 : index
    %c0_20 = arith.constant 0 : index
    %c0_21 = arith.constant 0 : index
    %19 = vector.load %arg9[%c0_19, %c0_20, %c0_21] : memref<2x1x192xf32, #tpu.memory_space<vmem>>, vector<1x1x192xf32>
    %20 = vector.shape_cast %19 : vector<1x1x192xf32> to vector<1x192xf32>
    %21 = vector.broadcast %20 : vector<1x192xf32> to vector<17x192xf32>
    %22 = arith.addf %18, %21 : vector<17x192xf32>
    %23 = vector.extract_strided_slice %22 {offsets = [0, 0], sizes = [17, 32], strides = [1, 1]} : vector<17x192xf32> to vector<17x32xf32>
    %24 = vector.extract_strided_slice %22 {offsets = [0, 32], sizes = [17, 32], strides = [1, 1]} : vector<17x192xf32> to vector<17x32xf32>
    %25 = vector.extract_strided_slice %22 {offsets = [0, 64], sizes = [17, 32], strides = [1, 1]} : vector<17x192xf32> to vector<17x32xf32>
    %26 = vector.extract_strided_slice %22 {offsets = [0, 96], sizes = [17, 32], strides = [1, 1]} : vector<17x192xf32> to vector<17x32xf32>
    %27 = vector.extract_strided_slice %22 {offsets = [0, 128], sizes = [17, 32], strides = [1, 1]} : vector<17x192xf32> to vector<17x32xf32>
    %28 = vector.extract_strided_slice %22 {offsets = [0, 160], sizes = [17, 32], strides = [1, 1]} : vector<17x192xf32> to vector<17x32xf32>
    %29 = arith.mulf %11, %23 : vector<17x32xf32>
    %30 = arith.truncf %24 : vector<17x32xf32> to vector<17x32xbf16>
    %cst_22 = arith.constant dense<0.000000e+00> : vector<17x32xf32>
    %31 = tpu.matmul %6, %30, %cst_22 {dimension_numbers = #tpu.dot_dimension_numbers<[1], [0], [0], [1], [0, 0, 1, 1], [], []>} : vector<17x17xbf16>, vector<17x32xbf16>, vector<17x32xf32> -> vector<17x32xf32>
    %32 = arith.addf %29, %31 : vector<17x32xf32>
    %33 = arith.truncf %25 : vector<17x32xf32> to vector<17x32xbf16>
    %cst_23 = arith.constant dense<0.000000e+00> : vector<17x32xf32>
    %34 = tpu.matmul %7, %33, %cst_23 {dimension_numbers = #tpu.dot_dimension_numbers<[1], [0], [0], [1], [0, 0, 1, 1], [], []>} : vector<17x17xbf16>, vector<17x32xbf16>, vector<17x32xf32> -> vector<17x32xf32>
    %35 = arith.addf %32, %34 : vector<17x32xf32>
    %36 = arith.mulf %14, %26 : vector<17x32xf32>
    %37 = arith.truncf %27 : vector<17x32xf32> to vector<17x32xbf16>
    %cst_24 = arith.constant dense<0.000000e+00> : vector<17x32xf32>
    %38 = tpu.matmul %8, %37, %cst_24 {dimension_numbers = #tpu.dot_dimension_numbers<[1], [0], [0], [1], [0, 0, 1, 1], [], []>} : vector<17x17xbf16>, vector<17x32xbf16>, vector<17x32xf32> -> vector<17x32xf32>
    %39 = arith.addf %36, %38 : vector<17x32xf32>
    %c0_25 = arith.constant 0 : index
    %c0_26 = arith.constant 0 : index
    %c0_27 = arith.constant 0 : index
    %40 = vector.load %arg10[%c0_25, %c0_26, %c0_27] : memref<2x32x32xbf16, #tpu.memory_space<vmem>>, vector<1x32x32xbf16>
    %41 = vector.shape_cast %40 : vector<1x32x32xbf16> to vector<32x32xbf16>
    %42 = arith.truncf %39 : vector<17x32xf32> to vector<17x32xbf16>
    %cst_28 = arith.constant dense<0.000000e+00> : vector<17x32xf32>
    %43 = tpu.matmul %42, %41, %cst_28 {dimension_numbers = #tpu.dot_dimension_numbers<[1], [0], [0], [1], [0, 0, 1, 1], [], []>} : vector<17x32xbf16>, vector<32x32xbf16>, vector<17x32xf32> -> vector<17x32xf32>
    %44 = arith.addf %28, %43 : vector<17x32xf32>
    %c0_29 = arith.constant 0 : index
    %c0_30 = arith.constant 0 : index
    %c0_31 = arith.constant 0 : index
    %45 = vector.load %arg11[%c0_29, %c0_30, %c0_31] : memref<2x32x32xbf16, #tpu.memory_space<vmem>>, vector<1x32x32xbf16>
    %46 = vector.shape_cast %45 : vector<1x32x32xbf16> to vector<32x32xbf16>
    %47 = arith.truncf %35 : vector<17x32xf32> to vector<17x32xbf16>
    %cst_32 = arith.constant dense<0.000000e+00> : vector<17x32xf32>
    %48 = tpu.matmul %47, %46, %cst_32 {dimension_numbers = #tpu.dot_dimension_numbers<[1], [0], [0], [1], [0, 0, 1, 1], [], []>} : vector<17x32xbf16>, vector<32x32xbf16>, vector<17x32xf32> -> vector<17x32xf32>
    %49 = arith.addf %44, %48 : vector<17x32xf32>
    %c1 = arith.constant 1 : index
    %c0_33 = arith.constant 0 : index
    %c0_34 = arith.constant 0 : index
    %50 = vector.load %arg8[%c1, %c0_33, %c0_34] : memref<2x32x192xbf16, #tpu.memory_space<vmem>>, vector<1x32x192xbf16>
    %51 = vector.shape_cast %50 : vector<1x32x192xbf16> to vector<32x192xbf16>
    %52 = arith.truncf %49 : vector<17x32xf32> to vector<17x32xbf16>
    %cst_35 = arith.constant dense<0.000000e+00> : vector<17x192xf32>
    %53 = tpu.matmul %52, %51, %cst_35 {dimension_numbers = #tpu.dot_dimension_numbers<[1], [0], [0], [1], [0, 0, 1, 1], [], []>} : vector<17x32xbf16>, vector<32x192xbf16>, vector<17x192xf32> -> vector<17x192xf32>
    %c1_36 = arith.constant 1 : index
    %c0_37 = arith.constant 0 : index
    %c0_38 = arith.constant 0 : index
    %54 = vector.load %arg9[%c1_36, %c0_37, %c0_38] : memref<2x1x192xf32, #tpu.memory_space<vmem>>, vector<1x1x192xf32>
    %55 = vector.shape_cast %54 : vector<1x1x192xf32> to vector<1x192xf32>
    %56 = vector.broadcast %55 : vector<1x192xf32> to vector<17x192xf32>
    %57 = arith.addf %53, %56 : vector<17x192xf32>
    %58 = vector.extract_strided_slice %57 {offsets = [0, 0], sizes = [17, 32], strides = [1, 1]} : vector<17x192xf32> to vector<17x32xf32>
    %59 = vector.extract_strided_slice %57 {offsets = [0, 32], sizes = [17, 32], strides = [1, 1]} : vector<17x192xf32> to vector<17x32xf32>
    %60 = vector.extract_strided_slice %57 {offsets = [0, 64], sizes = [17, 32], strides = [1, 1]} : vector<17x192xf32> to vector<17x32xf32>
    %61 = vector.extract_strided_slice %57 {offsets = [0, 96], sizes = [17, 32], strides = [1, 1]} : vector<17x192xf32> to vector<17x32xf32>
    %62 = vector.extract_strided_slice %57 {offsets = [0, 128], sizes = [17, 32], strides = [1, 1]} : vector<17x192xf32> to vector<17x32xf32>
    %63 = vector.extract_strided_slice %57 {offsets = [0, 160], sizes = [17, 32], strides = [1, 1]} : vector<17x192xf32> to vector<17x32xf32>
    %64 = arith.mulf %11, %58 : vector<17x32xf32>
    %65 = arith.truncf %59 : vector<17x32xf32> to vector<17x32xbf16>
    %cst_39 = arith.constant dense<0.000000e+00> : vector<17x32xf32>
    %66 = tpu.matmul %6, %65, %cst_39 {dimension_numbers = #tpu.dot_dimension_numbers<[1], [0], [0], [1], [0, 0, 1, 1], [], []>} : vector<17x17xbf16>, vector<17x32xbf16>, vector<17x32xf32> -> vector<17x32xf32>
    %67 = arith.addf %64, %66 : vector<17x32xf32>
    %68 = arith.truncf %60 : vector<17x32xf32> to vector<17x32xbf16>
    %cst_40 = arith.constant dense<0.000000e+00> : vector<17x32xf32>
    %69 = tpu.matmul %7, %68, %cst_40 {dimension_numbers = #tpu.dot_dimension_numbers<[1], [0], [0], [1], [0, 0, 1, 1], [], []>} : vector<17x17xbf16>, vector<17x32xbf16>, vector<17x32xf32> -> vector<17x32xf32>
    %70 = arith.addf %67, %69 : vector<17x32xf32>
    %71 = arith.mulf %14, %61 : vector<17x32xf32>
    %72 = arith.truncf %62 : vector<17x32xf32> to vector<17x32xbf16>
    %cst_41 = arith.constant dense<0.000000e+00> : vector<17x32xf32>
    %73 = tpu.matmul %8, %72, %cst_41 {dimension_numbers = #tpu.dot_dimension_numbers<[1], [0], [0], [1], [0, 0, 1, 1], [], []>} : vector<17x17xbf16>, vector<17x32xbf16>, vector<17x32xf32> -> vector<17x32xf32>
    %74 = arith.addf %71, %73 : vector<17x32xf32>
    %c1_42 = arith.constant 1 : index
    %c0_43 = arith.constant 0 : index
    %c0_44 = arith.constant 0 : index
    %75 = vector.load %arg10[%c1_42, %c0_43, %c0_44] : memref<2x32x32xbf16, #tpu.memory_space<vmem>>, vector<1x32x32xbf16>
    %76 = vector.shape_cast %75 : vector<1x32x32xbf16> to vector<32x32xbf16>
    %77 = arith.truncf %74 : vector<17x32xf32> to vector<17x32xbf16>
    %cst_45 = arith.constant dense<0.000000e+00> : vector<17x32xf32>
    %78 = tpu.matmul %77, %76, %cst_45 {dimension_numbers = #tpu.dot_dimension_numbers<[1], [0], [0], [1], [0, 0, 1, 1], [], []>} : vector<17x32xbf16>, vector<32x32xbf16>, vector<17x32xf32> -> vector<17x32xf32>
    %79 = arith.addf %63, %78 : vector<17x32xf32>
    %c1_46 = arith.constant 1 : index
    %c0_47 = arith.constant 0 : index
    %c0_48 = arith.constant 0 : index
    %80 = vector.load %arg11[%c1_46, %c0_47, %c0_48] : memref<2x32x32xbf16, #tpu.memory_space<vmem>>, vector<1x32x32xbf16>
    %81 = vector.shape_cast %80 : vector<1x32x32xbf16> to vector<32x32xbf16>
    %82 = arith.truncf %70 : vector<17x32xf32> to vector<17x32xbf16>
    %cst_49 = arith.constant dense<0.000000e+00> : vector<17x32xf32>
    %83 = tpu.matmul %82, %81, %cst_49 {dimension_numbers = #tpu.dot_dimension_numbers<[1], [0], [0], [1], [0, 0, 1, 1], [], []>} : vector<17x32xbf16>, vector<32x32xbf16>, vector<17x32xf32> -> vector<17x32xf32>
    %84 = arith.addf %79, %83 : vector<17x32xf32>
    %c0_50 = arith.constant 0 : index
    %c0_51 = arith.constant 0 : index
    %85 = vector.load %arg12[%c0_50, %c0_51] : memref<17x32xf32, #tpu.memory_space<vmem>>, vector<17x32xf32>
    tpu.vector_store %arg12[%c0_50, %c0_51], %84 {strides = array<i32>} : memref<17x32xf32, #tpu.memory_space<vmem>>, vector<17x32xf32>,
    return
  }
}

</mosaic_0001>

<bundles_post_ra>
// kernel: forward.1
= control target key start
LH: loop header
LB: loop body
LE: loop exit
PB: predicated region body
PF: predicated region fallthrough
CT: control target
= control target key end

     0   :  { %17 = vsyncpa [#allocation3], 0  ;;  %s1693_s0 = inlined_call_operand.vmem [shape: bf16[17,12], index: 0, kind: input, shape index: {}]   ;;  %s1694_s1 = inlined_call_operand.hbm [shape: bf16[12,32], index: 1, kind: input, shape index: {}]   ;;  %s1695_s2 = inlined_call_operand.hbm [shape: f32[1,32], index: 2, kind: input, shape index: {}]   ;;  %s1696_s3 = inlined_call_operand.hbm [shape: bf16[17,17], index: 3, kind: input, shape index: {}]   ;;  %s1697_s4 = inlined_call_operand.hbm [shape: bf16[17,17], index: 4, kind: input, shape index: {}]   ;;  %s1698_s5 = inlined_call_operand.hbm [shape: bf16[17,17], index: 5, kind: input, shape index: {}]   ;;  %s1699_s6 = inlined_call_operand.vmem [shape: f32[17,1], index: 6, kind: input, shape index: {}]   ;;  %s1700_s7 = inlined_call_operand.vmem [shape: f32[17,1], index: 7, kind: input, shape index: {}]   ;;  %s1701_s8 = inlined_call_operand.vmem [shape: bf16[2,32,192], index: 8, kind: input, shape index: {}]   ;;  %s1702_s9 = inlined_call_operand.hbm [shape: f32[2,1,192], index: 9, kind: input, shape index: {}]   ;;  %s1703_s10 = inlined_call_operand.vmem [shape: bf16[2,32,32], index: 10, kind: input, shape index: {}]   ;;  %s1704_s11 = inlined_call_operand.hbm [shape: bf16[2,32,32], index: 11, kind: input, shape index: {}]   ;;  %s1705_s12 = inlined_call_operand.hbm [shape: f32[17,32], index: 12, kind: output, shape index: {}]  }
   0x1   :  { %18 = vsyncpa [#allocation6], 0 }
   0x2   :  { %19 = vsyncpa [#allocation9], 0 }
   0x3   :  { %20 = vsyncpa [#allocation12], 0  ;;  %s42_s23 = sshll.u32 %s1695_s2, 4  ;;  %s43_s23 = int_to_ptr.hbm [resolvable:$true] %s42_s23 }
   0x4   :  { %21 = vsyncpa [#allocation4], 0  ;;  %s1308_s24 = smov [#allocation5]   ;;  %s65_s28 = sshll.u32 %s1697_s4, 4  ;;  %s66_s28 = int_to_ptr.hbm [resolvable:$true] %s65_s28 }
   0x5   :  { %s44_s25 = sshll.u32 %s1308_s24, 4  ;;  %s1309_s29 = smov [#allocation8]   ;;  %s45_s25 = int_to_ptr.vmem [resolvable:$true] %s44_s25 }
   0x6   :  { %47 = dma.hbm_to_vmem [thread:$0]  %s43_s23, 16, %s45_s25, [#allocation6]  }
   0x7   :  { %s67_s30 = sshll.u32 %s1309_s29, 4  ;;  %s97_s15 = sshll.u32 %s1702_s9, 4  ;;  %s68_s30 = int_to_ptr.vmem [resolvable:$true] %s67_s30  ;;  %s98_s15 = int_to_ptr.hbm [resolvable:$true] %s97_s15 }
   0x8   :  { %s1310_s2 = smov 64   ;;  %s1311_s16 = smov 4  }
   0x9   :  { %73 = dma.hbm_to_vmem [thread:$0]  %s66_s28, 192, %s68_s30, [#allocation9], %s1310_s2, %s1310_s2, %s1311_s16  }
   0xa   :  { %s1312_s17 = smov [#allocation11]   ;;  %s28_s20 = sshll.u32 %s1694_s1, 4  ;;  %s29_s20 = int_to_ptr.hbm [resolvable:$true] %s28_s20 }
   0xb   :  { %s99_s18 = sshll.u32 %s1312_s17, 4  ;;  %s1313_s21 = smov 32   ;;  %s100_s18 = int_to_ptr.vmem [resolvable:$true] %s99_s18 }
   0xc   :  { %s1314_s22 = smov 2   ;;  %s1315_s9 = smov [#allocation2]  }
   0xd   :  { %105 = dma.hbm_to_vmem [thread:$0]  %s98_s15, 64, %s100_s18, [#allocation12], %s1313_s21, %s1313_s21, %s1314_s22  }
   0xe   :  { %s30_s23 = sshll.u32 %s1315_s9, 4  ;;  %s52_s26 = sshll.u32 %s1696_s3, 4  ;;  %s31_s23 = int_to_ptr.vmem [resolvable:$true] %s30_s23  ;;  %s53_s26 = int_to_ptr.hbm [resolvable:$true] %s52_s26 }
   0xf   :  { %36 = dma.hbm_to_vmem [thread:$0]  %s29_s20, 128, %s31_s23, [#allocation3], %s1310_s2, %s1310_s2, %s1311_s16  }
  0x10   :  { %s78_s28 = sshll.u32 %s1698_s5, 4  ;;  %s1316_s29 = smov [#allocation7]   ;;  %s79_s28 = int_to_ptr.hbm [resolvable:$true] %s78_s28 }
  0x11   :  { %s54_s30 = sshll.u32 %s1316_s29, 4  ;;  %s1317_s13 = smov [#allocation10]   ;;  %s55_s30 = int_to_ptr.vmem [resolvable:$true] %s54_s30 }
  0x12   :  { %60 = dma.hbm_to_vmem [thread:$0]  %s53_s26, 192, %s55_s30, [#allocation6], %s1310_s2, %s1310_s2, %s1311_s16  }
  0x13   :  { %s80_s3 = sshll.u32 %s1317_s13, 4  ;;  %s112_s17 = sshll.u32 %s1704_s11, 4  ;;  %s81_s3 = int_to_ptr.vmem [resolvable:$true] %s80_s3  ;;  %s113_s17 = int_to_ptr.hbm [resolvable:$true] %s112_s17 }
  0x14   :  { %86 = dma.hbm_to_vmem [thread:$0]  %s79_s28, 192, %s81_s3, [#allocation9], %s1310_s2, %s1310_s2, %s1311_s16  }
  0x15   :  { %s1318_s5 = smov [#allocation13]  }
  0x16   :  { %s114_s18 = sshll.u32 %s1318_s5, 4  ;;  %s115_s18 = int_to_ptr.vmem [resolvable:$true] %s114_s18 }
  0x17   :  { %120 = dma.hbm_to_vmem [thread:$0]  %s113_s17, 512, %s115_s18, [#allocation12], %s1310_s2, %s1310_s2, %s1311_s16  }
  0x18   :  { %1298 = dma.done.wait [#allocation3], 128  }
  0x19   :  { %1299 = vsyncadd [#allocation3], 4294967168 }
  0x1a   :  { %1300 = dma.done.wait [#allocation6], 208  }
  0x1b   :  { %1301 = vsyncadd [#allocation6], 4294967088 }
  0x1c   :  { %1302 = dma.done.wait [#allocation9], 384  }
  0x1d   :  { %1303 = vsyncadd [#allocation9], 4294966912 }
  0x1e   :  { %1304 = dma.done.wait [#allocation12], 576  }
  0x1f   :  { %1305 = vsyncadd [#allocation12], 4294966720  ;;  %v947_v0 = vld [vmem:[#allocation2] sm:$0xf]  ;;  %v1064_v1 = vld [vmem:[#allocation2] sm:$0x30] }
  0x20   :  { %vm179_vm0 = vcmask 1045504   ;;  %v948_v2 = vor.u32 %v1064_v1, %v947_v0  ;;  %v1063_v4 = vld [vmem:[%s1693_s0] sm:$0xff]  ;;  %vm172_vm1 = vcmask 97280   ;;  %v152_v5 = vld [vmem:[%s1693_s0 + $0x8] sm:$0x1]  ;;  %v1319_v21 = vmov 0  }
  0x21   :  { %v164_v6 = vunpack.c.l.b16 %v152_v5  ;;  %v961_v8 = vld [vmem:[%s1701_s8 + $0x10] sm:$0xf]  ;;  %v1071_v9 = vld [vmem:[%s1701_s8 + $0x14] sm:$0xf0]  ;;  %v1070_v10 = vld [vmem:[%s1701_s8 + $0x14] sm:$0xf]  ;;  %1102 = vset.pattern.permute.xlu2 %v1319_v21  ;;  %1103 = vset.pattern.permute.xlu1 %v1319_v21 }
  0x22   :  { %v181_v3 = vsel %vm179_vm0, %v948_v2, 0  ;;  %v962_v11 = vor.u32 %v1071_v9, %v961_v8  ;;  %v963_v12 = vld [vmem:[%s1701_s8 + $0x18] sm:$0xf0]  ;;  %v953_v14 = vld [vmem:[%s1701_s8] sm:$0xf]  ;;  %1104 = vset.pattern.permute.xlu0 %v1319_v21  ;;  %v229_v23 = vld [vmem:[%s1700_s7 + $0x8] sm:$0xff] }
  0x23   :  { %190 = vmatpush.bf16.msra.mxu0 %v181_v3  ;;  %v166_v7 = vpack.c.b16 %v164_v6, %v164_v6  ;;  %v966_v13 = vor.u32 %v1070_v10, %v963_v12  ;;  %v1069_v15 = vld [vmem:[%s1701_s8 + $0x4] sm:$0xf0]  ;;  %v1068_v16 = vld [vmem:[%s1701_s8 + $0x4] sm:$0xf]  ;;  %v955_v18 = vld [vmem:[%s1701_s8 + $0x8] sm:$0xf0] }
  0x24   :  { %291 = vmatpush.bf16.msra.mxu1 %v962_v11  ;;  %1084 = vmatpush.bf16.msra.mxu3 %v962_v11  ;;  %v954_v17 = vor.u32 %v1069_v15, %v953_v14  ;;  %v958_v19 = vor.u32 %v1068_v16, %v955_v18  ;;  %v228_v20 = vld [vmem:[%s1700_s7] sm:$0xff]  ;;  %v1105_v24 = vld [vmem:[#allocation5] ss:$0 sm:$0xff]  ;;  %vm278_vm2 = vcmask 261120   ;;  %v230_v29 = vld [vmem:[%s1700_s7 + $0x10] sm:$0x1] }
  0x25   :  { %309 = vmatpush.bf16.msra.mxu2 %v966_v13  ;;  %233 = vperm.xlu2 %1102, %v228_v20   ;;  %v211_v33 = vld [vmem:[%s1699_s6 + $0x8] sm:$0xff]  ;;  %s1320_s7 = smov 96   ;;  %vm348_vm3 = vcmask 1040384   ;;  %vm341_vm4 = vcmask 138240   ;;  %v1512_v5 = vld [vmem:[#allocation8] sm:$0xff]  ;;  %v210_v14 = vld [vmem:[%s1699_s6] sm:$0xff] }
  0x26   :  { %949 = vmatmul.msk.bf16.vlgmr.msra.gmra.mxu0 %vm172_vm1, %v1063_v4  ;;  %v252_v37 = vld [vmem:[#allocation11] sm:$0x3]  ;;  %v1485_v50 = vsel %vm348_vm3, 65535, %v1319_v21  ;;  %v1500_v58 = vld [vmem:[#allocation10] sm:$0xff]  ;;  %v209_v59 = vld [vmem:[#allocation10 + $0x8] sm:$0x1] }
  0x27   :  { %v254_v38 = vperm.slane %v252_v37, 0  ;;  %v255_v44 = vperm.slane %v252_v37, 1  ;;  %v428_v60 = vunpack.c.l.b16 %v209_v59  ;;  %v1510_v4 = vld [vmem:[#allocation7] sm:$0xff]  ;;  %v203_v6 = vld [vmem:[#allocation7 + $0x8] sm:$0x1]  ;;  %s925_s23 = sshll.u32 %s1705_s12, 4  ;;  %s926_s23 = int_to_ptr.hbm [resolvable:$true] %s925_s23 }
  0x28   :  { %292 = vmatpush.bf16.msra.mxu1 %v954_v17  ;;  %1085 = vmatpush.bf16.msra.mxu3 %v954_v17  ;;  %v331_v8 = vunpack.c.l.b16 %v203_v6  ;;  %v212_v16 = vld [vmem:[%s1699_s6 + $0x10] sm:$0x1]  ;;  %v1074_v20 = vld [vmem:[#allocation13] sm:$0xff]  ;;  %vm917_vm5 = vcmask 253952   ;;  %s1322_s6 = smov 128   ;;  %s1323_s24 = smov 8  }
  0x29   :  { %310 = vmatpush.bf16.msra.mxu2 %v958_v19  ;;  %v1504_v61 = vpack.c.b16 %v428_v60, %v428_v60  ;;  %v1075_v19 = vld [vmem:[#allocation13 + $0x8] sm:$0xff] }
  0x2a   :  { %v1518_v10 = vpack.c.b16 %v331_v8, %v331_v8 }
  0x2d   :  { %238 = vperm.xlu2 %1102, %v229_v23  }
  0x35   :  { %243 = vperm.xlu2 %1102, %v230_v29  }
  0x36   :  { %950 = vmatmul.msk.bf16.gmra.mxu0 %vm172_vm1, %v166_v7  ;;  %v206_v7 = vld [vmem:[#allocation8 + $0x8] sm:$0x1] }
  0x37   :  { %v380_v9 = vunpack.c.l.b16 %v206_v7 }
  0x39   :  { %v1520_v11 = vpack.c.b16 %v380_v9, %v380_v9 }
  0x3d   :  { %220 = vperm.xlu2 %1102, %v211_v33  }
  0x7f   :  { %v1535_v18 = vpop.permute.xlu2 %233 }
  0x87   :  { %v1537_v21 = vpop.permute.xlu2 %238 }
  0xa3   :  { %v192_v22 = vpop.f32.mrf.mxu0 }
  0xa4   :  { %v193_v26 = vadd.f32 %v1105_v24, %v192_v22 }
  0xab   :  { %v194_v25 = vpop.f32.mrf.mxu0 }
  0xac   :  { %v195_v27 = vadd.f32 %v1105_v24, %v194_v25 }
  0xae   :  { %v250_v28 = vpack.c.bf16 %v195_v27, %v193_v26 }
  0xb0   :  { %967 = vmatmul.msk.bf16.vlgmr.msra.gmra.mxu1 %vm278_vm2, %v250_v28  ;;  %969 = vmatmul.msk.bf16.vlgmr.msra.gmra.mxu2 %vm278_vm2, %v250_v28 }
  0xb3   :  { %v197_v30 = vpop.f32.mrf.mxu0 }
  0xb4   :  { %v198_v31 = vadd.f32 %v1105_v24, %v197_v30  ;;  %v1539_v24 = vpop.permute.xlu2 %243 }
  0xb6   :  { %v251_v32 = vpack.c.bf16 %v198_v31, %v198_v31 }
  0xb8   :  { %968 = vmatmul.msk.bf16.vlgmr.msra.gmra.mxu3 %vm278_vm2, %v251_v32 }
  0xbb   :  { %v199_v34 = vpop.f32.mrf.mxu0 }
  0xc0   :  { %970 = vmatmul.msk.bf16.gmra.mxu2 %vm278_vm2, %v251_v32 }
 0x12d   :  { %v294_v36 = vpop.f32.mrf.mxu1 }
 0x12e   :  { %v1481_v48 = vadd.f32 %v294_v36, %v254_v38 }
 0x130   :  { %v418_v27 = vmul.f32 %v1481_v48, %v1535_v18 }
 0x133   :  { %v312_v35 = vpop.f32.mrf.mxu2 }
 0x134   :  { %v1496_v55 = vadd.f32 %v312_v35, %v255_v44  ;;  %v1545_v35 = vpop.permute.xlu2 %220 }
 0x135   :  { %v296_v43 = vpop.f32.mrf.mxu1 }
 0x136   :  { %v1479_v45 = vadd.f32 %v296_v43, %v254_v38 }
 0x138   :  { %v324_v52 = vpack.c.bf16 %v1479_v45, %v1481_v48  ;;  %v419_v28 = vmul.f32 %v1479_v45, %v1537_v21  ;;  %v322_v36 = vmul.f32 %v1479_v45, %v1545_v35 }
 0x13b   :  { %v299_v39 = vpop.f32.mrf.mxu3  ;;  %v314_v40 = vpop.f32.mrf.mxu2 }
 0x13c   :  { %v1473_v41 = vadd.f32 %v299_v39, %v254_v38  ;;  %v1491_v53 = vadd.f32 %v314_v40, %v255_v44 }
 0x13e   :  { %v325_v42 = vpack.c.bf16 %v1473_v41, %v1473_v41  ;;  %v421_v57 = vpack.c.bf16 %v1491_v53, %v1496_v55  ;;  %v420_v37 = vmul.f32 %v1473_v41, %v1539_v24 }
 0x140   :  { %385 = vrot.lane.b32.xlu1 %v325_v42, %s1310_s2  ;;  %338 = vrot.lane.b32.xlu0 %v325_v42, %s1320_s7 }
 0x143   :  { %v301_v46 = vpop.f32.mrf.mxu3  ;;  %v317_v47 = vpop.f32.mrf.mxu2 }
 0x144   :  { %v1483_v49 = vadd.f32 %v317_v47, %v255_v44 }
 0x146   :  { %v422_v51 = vpack.c.bf16 %v1483_v49, %v1483_v49 }
 0x148   :  { %383 = vrot.lane.b32.xlu1 %v324_v52, %s1310_s2  ;;  %336 = vrot.lane.b32.xlu0 %v324_v52, %s1320_s7  ;;  %v438_v54 = vand.u32 %v422_v51, %v1485_v50 }
 0x14a   :  { %446 = vmatpush.bf16.msrb.mxu1 %v438_v54 }
 0x14b   :  { %v319_v56 = vpop.f32.mrf.mxu2 }
 0x14e   :  { %447 = vmatpush.bf16.msrb.mxu1 %v421_v57 }
 0x151   :  { %987 = vmatmul.msk.bf16.vlgmr.msrb.gmra.mxu1 %vm341_vm4, %v1500_v58 }
 0x161   :  { %988 = vmatmul.msk.bf16.gmra.mxu1 %vm341_vm4, %v1504_v61 }
 0x1b2   :  { %v386_v62 = vpop.permute.xlu1 %385  ;;  %v339_v63 = vpop.permute.xlu0 %338 }
 0x1b3   :  { %v395_v0 = vand.u32 %v386_v62, %v1485_v50  ;;  %v352_v1 = vand.u32 %v1485_v50, %v339_v63  ;;  %v1073_v63 = vld [vmem:[%s1703_s10 + $0x8] sm:$0xff] }
 0x1b4   :  { %509 = vmatpush.bf16.msrb.mxu2 %v1073_v63 }
 0x1b5   :  { %360 = vmatpush.bf16.msrb.mxu3 %v352_v1  ;;  %403 = vmatpush.bf16.msrb.mxu0 %v395_v0  ;;  %v1072_v0 = vld [vmem:[%s1703_s10] sm:$0xff] }
 0x1b8   :  { %510 = vmatpush.bf16.msrb.mxu2 %v1072_v0 }
 0x1ba   :  { %v384_v2 = vpop.permute.xlu1 %383  ;;  %v337_v3 = vpop.permute.xlu0 %336 }
 0x1bb   :  { %361 = vmatpush.bf16.msrb.mxu3 %v337_v3  ;;  %404 = vmatpush.bf16.msrb.mxu0 %v384_v2 }
 0x1be   :  { %975 = vmatmul.msk.bf16.vlgmr.msrb.gmra.mxu3 %vm341_vm4, %v1510_v4  ;;  %981 = vmatmul.msk.bf16.vlgmr.msrb.gmra.mxu0 %vm341_vm4, %v1512_v5 }
 0x1bf   :  { %566 = vmatpush.bf16.msra.mxu3 %v1075_v19  ;;  %v1025_v19 = vld [vmem:[%s1701_s8 + $0x38] sm:$0xf0] }
 0x1c3   :  { %567 = vmatpush.bf16.msra.mxu3 %v1074_v20  ;;  %v1015_v20 = vld [vmem:[%s1701_s8 + $0x20] sm:$0xf] }
 0x1ce   :  { %v449_v12 = vpop.f32.mrf.mxu1  ;;  %976 = vmatmul.msk.bf16.gmra.mxu3 %vm341_vm4, %v1518_v10  ;;  %982 = vmatmul.msk.bf16.gmra.mxu0 %vm341_vm4, %v1520_v11 }
 0x1cf   :  { %461 = vrot.lane.b32.xlu0 %v449_v12, %s1320_s7 }
 0x1d6   :  { %v451_v13 = vpop.f32.mrf.mxu1 }
 0x1d7   :  { %463 = vrot.lane.b32.xlu1 %v451_v13, %s1320_s7 }
 0x1de   :  { %v454_v15 = vpop.f32.mrf.mxu1 }
 0x1df   :  { %215 = vperm.xlu1 %1103, %v210_v14   ;;  %465 = vrot.lane.b32.xlu0 %v454_v15, %s1320_s7  ;;  %v1023_v14 = vld [vmem:[%s1701_s8 + $0x30] sm:$0xf]  ;;  %v1079_v15 = vld [vmem:[%s1701_s8 + $0x34] sm:$0xf0] }
 0x1e6   :  { %v456_v17 = vpop.f32.mrf.mxu1 }
 0x1e7   :  { %225 = vperm.xlu1 %1103, %v212_v16   ;;  %v1078_v16 = vld [vmem:[%s1701_s8 + $0x34] sm:$0xf]  ;;  %v1024_v17 = vor.u32 %v1079_v15, %v1023_v14 }
 0x1e9   :  { %645 = vmatpush.bf16.msra.mxu0 %v1024_v17 }
 0x23b   :  { %v406_v22 = vpop.f32.mrf.mxu0 }
 0x241   :  { %v363_v23 = vpop.f32.mrf.mxu3  ;;  %v462_v26 = vpop.permute.xlu0 %461 }
 0x242   :  { %v470_v30 = vadd.f32 %v462_v26, %v418_v27  ;;  %v1017_v26 = vld [vmem:[%s1701_s8 + $0x28] sm:$0xf0] }
 0x243   :  { %v408_v25 = vpop.f32.mrf.mxu0 }
 0x249   :  { %v464_v29 = vpop.permute.xlu1 %463  ;;  %v365_v32 = vpop.f32.mrf.mxu3 }
 0x24a   :  { %v471_v31 = vadd.f32 %v464_v29, %v419_v28  ;;  %v373_v40 = vadd.f32 %v365_v32, %v322_v36 }
 0x24b   :  { %v411_v33 = vpop.f32.mrf.mxu0 }
 0x24c   :  { %v477_v34 = vpack.c.bf16 %v471_v31, %v470_v30  ;;  %v416_v52 = vadd.f32 %v408_v25, %v373_v40  ;;  %v1076_v25 = vld [vmem:[%s1701_s8 + $0x24] sm:$0xf] }
 0x24d   :  { %v1020_v28 = vor.u32 %v1076_v25, %v1017_v26 }
 0x24e   :  { %481 = vrot.lane.b32.xlu0 %v477_v34, %s1313_s21 }
 0x251   :  { %v1552_v38 = vpop.permute.xlu1 %215  ;;  %v466_v39 = vpop.permute.xlu0 %465 }
 0x252   :  { %v321_v42 = vmul.f32 %v1481_v48, %v1552_v38  ;;  %v472_v43 = vadd.f32 %v466_v39, %v420_v37  ;;  %v368_v44 = vpop.f32.mrf.mxu3 }
 0x253   :  { %v413_v46 = vpop.f32.mrf.mxu0 }
 0x254   :  { %v372_v47 = vadd.f32 %v363_v23, %v321_v42  ;;  %v478_v51 = vpack.c.bf16 %v472_v43, %v472_v43  ;;  %v1028_v23 = vor.u32 %v1078_v16, %v1025_v19 }
 0x256   :  { %v415_v54 = vadd.f32 %v406_v22, %v372_v47  ;;  %483 = vrot.lane.b32.xlu2 %v478_v51, %s1313_s21  ;;  %v1077_v22 = vld [vmem:[%s1701_s8 + $0x24] sm:$0xf0]  ;;  %663 = vmatpush.bf16.msra.mxu1 %v1028_v23 }
 0x257   :  { %v1016_v27 = vor.u32 %v1077_v22, %v1015_v20  ;;  %v1083_v20 = vld [vmem:[#allocation13 + $0x18] sm:$0xff]  ;;  %v1082_v22 = vld [vmem:[#allocation13 + $0x10] sm:$0xff] }
 0x258   :  { %v540_v45 = vpack.c.bf16 %v416_v52, %v415_v54  ;;  %v601_v52 = vld [vmem:[#allocation11 + $0x2] sm:$0x3] }
 0x259   :  { %v1557_v56 = vpop.permute.xlu1 %225  ;;  %646 = vmatpush.bf16.msra.mxu0 %v1016_v27  ;;  %v603_v54 = vperm.slane %v601_v52, 0 }
 0x25a   :  { %1007 = vmatmul.msk.bf16.vlgmr.msra.gmra.mxu3 %vm278_vm2, %v540_v45  ;;  %v370_v57 = vpop.f32.mrf.mxu3  ;;  %v323_v59 = vmul.f32 %v1473_v41, %v1557_v56  ;;  %664 = vmatpush.bf16.msra.mxu1 %v1020_v28 }
 0x25c   :  { %v374_v60 = vadd.f32 %v368_v44, %v323_v59 }
 0x25e   :  { %v417_v48 = vadd.f32 %v411_v33, %v374_v60 }
 0x260   :  { %v541_v62 = vpack.c.bf16 %v417_v48, %v417_v48  ;;  %v604_v48 = vperm.slane %v601_v52, 1  ;;  %v1080_v52 = vld [vmem:[%s1703_s10 + $0x10] sm:$0xff] }
 0x26a   :  { %1008 = vmatmul.msk.bf16.gmra.mxu3 %vm278_vm2, %v541_v62 }
 0x2b0   :  { %v484_v2 = vpop.permute.xlu2 %483 }
 0x2c0   :  { %v482_v1 = vpop.permute.xlu0 %481 }
 0x2c1   :  { %997 = vmatmul.msk.bf16.vlgmr.msrb.gmra.mxu2 %vm278_vm2, %v482_v1 }
 0x2d1   :  { %998 = vmatmul.msk.bf16.gmra.mxu2 %vm278_vm2, %v484_v2 }
 0x2dd   :  { %v569_v41 = vpop.f32.mrf.mxu3 }
 0x2de   :  { %581 = vrot.lane.b32.xlu2 %v569_v41, %s1313_s21 }
 0x2e5   :  { %v571_v3 = vpop.f32.mrf.mxu3 }
 0x2ed   :  { %v574_v6 = vpop.f32.mrf.mxu3 }
 0x2ee   :  { %585 = vrot.lane.b32.xlu2 %v574_v6, %s1313_s21 }
 0x2f5   :  { %v576_v7 = vpop.f32.mrf.mxu3 }
 0x338   :  { %v582_v33 = vpop.permute.xlu2 %581 }
 0x344   :  { %v512_v8 = vpop.f32.mrf.mxu2 }
 0x345   :  { %524 = vrot.lane.b32.xlu0 %v512_v8, %s1313_s21 }
 0x348   :  { %v586_v43 = vpop.permute.xlu2 %585 }
 0x34c   :  { %v514_v9 = vpop.f32.mrf.mxu2 }
 0x34d   :  { %583 = vrot.lane.b32.xlu0 %v571_v3, %s1313_s21  ;;  %526 = vrot.lane.b32.xlu1 %v514_v9, %s1313_s21 }
 0x354   :  { %v517_v12 = vpop.f32.mrf.mxu2 }
 0x355   :  { %528 = vrot.lane.b32.xlu1 %v517_v12, %s1313_s21 }
 0x35c   :  { %v519_v13 = vpop.f32.mrf.mxu2 }
 0x3b7   :  { %v525_v29 = vpop.permute.xlu0 %524 }
 0x3b8   :  { %v533_v30 = vadd.f32 %v525_v29, %v1496_v55 }
 0x3ba   :  { %v590_v36 = vadd.f32 %v582_v33, %v533_v30 }
 0x3bf   :  { %v527_v31 = vpop.permute.xlu1 %526  ;;  %v584_v34 = vpop.permute.xlu0 %583 }
 0x3c0   :  { %v534_v32 = vadd.f32 %v527_v31, %v1491_v53 }
 0x3c2   :  { %v591_v37 = vadd.f32 %v584_v34, %v534_v32 }
 0x3c4   :  { %v598_v39 = vpack.c.bf16 %v591_v37, %v590_v36 }
 0x3c6   :  { %609 = vrot.lane.b32.xlu0 %v598_v39, %s1320_s7 }
 0x3c7   :  { %v529_v40 = vpop.permute.xlu1 %528 }
 0x3c8   :  { %v535_v42 = vadd.f32 %v529_v40, %v1483_v49 }
 0x3ca   :  { %v592_v44 = vadd.f32 %v586_v43, %v535_v42 }
 0x3cc   :  { %v599_v46 = vpack.c.bf16 %v592_v44, %v592_v44 }
 0x3ce   :  { %611 = vrot.lane.b32.xlu1 %v599_v46, %s1320_s7 }
 0x438   :  { %v610_v47 = vpop.permute.xlu0 %609 }
 0x439   :  { %1029 = vmatmul.msk.bf16.vlgmr.msra.gmra.mxu0 %vm278_vm2, %v610_v47  ;;  %1031 = vmatmul.msk.bf16.vlgmr.msra.gmra.mxu1 %vm278_vm2, %v610_v47 }
 0x440   :  { %v612_v53 = vpop.permute.xlu1 %611 }
 0x449   :  { %1030 = vmatmul.msk.bf16.gmra.mxu0 %vm278_vm2, %v612_v53  ;;  %1032 = vmatmul.msk.bf16.gmra.mxu1 %vm278_vm2, %v612_v53 }
 0x4b6   :  { %v648_v55 = vpop.f32.mrf.mxu0  ;;  %v666_v51 = vpop.f32.mrf.mxu1 }
 0x4b7   :  { %v1610_v57 = vadd.f32 %v648_v55, %v603_v54  ;;  %v1630_v7 = vadd.f32 %v666_v51, %v604_v48  ;;  %v1081_v51 = vld [vmem:[%s1703_s10 + $0x18] sm:$0xff]  ;;  %s1321_s10 = smov [#allocation14]  }
 0x4b8   :  { %818 = vmatpush.bf16.msrb.mxu1 %v1081_v51 }
 0x4b9   :  { %v740_v29 = vmul.f32 %v1610_v57, %v1535_v18 }
 0x4bc   :  { %819 = vmatpush.bf16.msrb.mxu1 %v1080_v52 }
 0x4be   :  { %v650_v49 = vpop.f32.mrf.mxu0  ;;  %v668_v45 = vpop.f32.mrf.mxu1 }
 0x4bf   :  { %v1612_v59 = vadd.f32 %v650_v49, %v603_v54  ;;  %v1625_v3 = vadd.f32 %v668_v45, %v604_v48 }
 0x4c1   :  { %v678_v60 = vpack.c.bf16 %v1612_v59, %v1610_v57  ;;  %v743_v12 = vpack.c.bf16 %v1625_v3, %v1630_v7  ;;  %v741_v30 = vmul.f32 %v1612_v59, %v1537_v21  ;;  %v676_v36 = vmul.f32 %v1612_v59, %v1545_v35 }
 0x4c3   :  { %682 = vrot.lane.b32.xlu1 %v678_v60, %s1320_s7 }
 0x4c6   :  { %v653_v62 = vpop.f32.mrf.mxu0  ;;  %v671_v63 = vpop.f32.mrf.mxu1 }
 0x4c7   :  { %v1617_v0 = vadd.f32 %v653_v62, %v603_v54  ;;  %v1619_v1 = vadd.f32 %v671_v63, %v604_v48 }
 0x4c9   :  { %v744_v2 = vpack.c.bf16 %v1619_v1, %v1619_v1  ;;  %v679_v41 = vpack.c.bf16 %v1617_v0, %v1617_v0  ;;  %v677_v47 = vmul.f32 %v1617_v0, %v1557_v56 }
 0x4cb   :  { %v746_v6 = vand.u32 %v744_v2, %v1485_v50  ;;  %713 = vrot.lane.b32.xlu0 %v679_v41, %s1310_s2  ;;  %684 = vrot.lane.b32.xlu2 %v679_v41, %s1320_s7 }
 0x4cd   :  { %754 = vmatpush.bf16.msrb.mxu0 %v746_v6 }
 0x4ce   :  { %v655_v8 = vpop.f32.mrf.mxu0  ;;  %v673_v9 = vpop.f32.mrf.mxu1 }
 0x4d1   :  { %755 = vmatpush.bf16.msrb.mxu0 %v743_v12 }
 0x4d3   :  { %711 = vrot.lane.b32.xlu2 %v678_v60, %s1310_s2 }
 0x4d4   :  { %1037 = vmatmul.msk.bf16.vlgmr.msrb.gmra.mxu0 %vm341_vm4, %v1500_v58 }
 0x4e4   :  { %1038 = vmatmul.msk.bf16.gmra.mxu0 %vm341_vm4, %v1504_v61 }
 0x525   :  { %v685_v13 = vpop.permute.xlu2 %684 }
 0x526   :  { %v688_v14 = vand.u32 %v685_v13, %v1485_v50 }
 0x528   :  { %696 = vmatpush.bf16.msra.mxu2 %v688_v14 }
 0x52d   :  { %v712_v19 = vpop.permute.xlu2 %711 }
 0x535   :  { %v683_v15 = vpop.permute.xlu1 %682 }
 0x536   :  { %697 = vmatpush.bf16.msra.mxu2 %v683_v15 }
 0x539   :  { %1033 = vmatmul.msk.bf16.vlgmr.msra.gmra.mxu2 %vm341_vm4, %v1510_v4 }
 0x53a   :  { %876 = vmatpush.bf16.msrb.mxu2 %v1083_v20 }
 0x53d   :  { %v714_v16 = vpop.permute.xlu0 %713 }
 0x53e   :  { %v717_v17 = vand.u32 %v714_v16, %v1485_v50  ;;  %877 = vmatpush.bf16.msrb.mxu2 %v1082_v22 }
 0x540   :  { %725 = vmatpush.bf16.msrb.mxu3 %v717_v17 }
 0x544   :  { %726 = vmatpush.bf16.msrb.mxu3 %v712_v19 }
 0x547   :  { %1035 = vmatmul.msk.bf16.vlgmr.msrb.gmra.mxu3 %vm341_vm4, %v1512_v5  ;;  %v742_v5 = vmul.f32 %v1617_v0, %v1539_v24  ;;  %v675_v24 = vmul.f32 %v1610_v57, %v1552_v38 }
 0x549   :  { %1034 = vmatmul.msk.bf16.gmra.mxu2 %vm341_vm4, %v1518_v10 }
 0x551   :  { %v757_v58 = vpop.f32.mrf.mxu0 }
 0x552   :  { %769 = vrot.lane.b32.xlu0 %v757_v58, %s1320_s7 }
 0x557   :  { %1036 = vmatmul.msk.bf16.gmra.mxu3 %vm341_vm4, %v1520_v11 }
 0x559   :  { %v759_v61 = vpop.f32.mrf.mxu0 }
 0x55a   :  { %771 = vrot.lane.b32.xlu1 %v759_v61, %s1320_s7 }
 0x561   :  { %v762_v4 = vpop.f32.mrf.mxu0 }
 0x562   :  { %773 = vrot.lane.b32.xlu2 %v762_v4, %s1320_s7 }
 0x569   :  { %v764_v50 = vpop.f32.mrf.mxu0 }
 0x5bc   :  { %v774_v10 = vpop.permute.xlu2 %773  ;;  %v699_v23 = vpop.f32.mrf.mxu2 }
 0x5bd   :  { %v780_v25 = vadd.f32 %v774_v10, %v742_v5  ;;  %v708_v39 = vadd.f32 %v699_v23, %v675_v24 }
 0x5bf   :  { %v787_v26 = vpack.c.bf16 %v780_v25, %v780_v25 }
 0x5c1   :  { %792 = vrot.lane.b32.xlu1 %v787_v26, %s1313_s21 }
 0x5c4   :  { %v701_v11 = vpop.f32.mrf.mxu2  ;;  %v770_v27 = vpop.permute.xlu0 %769 }
 0x5c5   :  { %v778_v33 = vadd.f32 %v770_v27, %v740_v29  ;;  %v709_v40 = vadd.f32 %v701_v11, %v676_v36 }
 0x5ca   :  { %v728_v28 = vpop.f32.mrf.mxu3 }
 0x5cb   :  { %v737_v18 = vadd.f32 %v728_v28, %v708_v39 }
 0x5cc   :  { %v772_v31 = vpop.permute.xlu1 %771  ;;  %v704_v32 = vpop.f32.mrf.mxu2 }
 0x5cd   :  { %v779_v34 = vadd.f32 %v772_v31, %v741_v30  ;;  %v710_v38 = vadd.f32 %v704_v32, %v677_v47 }
 0x5cf   :  { %v786_v37 = vpack.c.bf16 %v779_v34, %v778_v33 }
 0x5d1   :  { %790 = vrot.lane.b32.xlu0 %v786_v37, %s1313_s21 }
 0x5d2   :  { %v730_v42 = vpop.f32.mrf.mxu3 }
 0x5d3   :  { %v738_v43 = vadd.f32 %v730_v42, %v709_v40 }
 0x5d4   :  { %v706_v44 = vpop.f32.mrf.mxu2 }
 0x5d5   :  { %v850_v21 = vpack.c.bf16 %v738_v43, %v737_v18 }
 0x5d7   :  { %1061 = vmatmul.msk.bf16.vlgmr.msrb.gmra.mxu2 %vm278_vm2, %v850_v21 }
 0x5da   :  { %v733_v46 = vpop.f32.mrf.mxu3 }
 0x5db   :  { %v739_v53 = vadd.f32 %v733_v46, %v710_v38 }
 0x5dd   :  { %v851_v35 = vpack.c.bf16 %v739_v53, %v739_v53 }
 0x5e2   :  { %v735_v55 = vpop.f32.mrf.mxu3 }
 0x5e7   :  { %1062 = vmatmul.msk.bf16.gmra.mxu2 %vm278_vm2, %v851_v35 }
 0x633   :  { %v793_v56 = vpop.permute.xlu1 %792 }
 0x643   :  { %v791_v54 = vpop.permute.xlu0 %790 }
 0x644   :  { %1051 = vmatmul.msk.bf16.vlgmr.msrb.gmra.mxu1 %vm278_vm2, %v791_v54 }
 0x654   :  { %1052 = vmatmul.msk.bf16.gmra.mxu1 %vm278_vm2, %v793_v56 }
 0x65a   :  { %v879_v49 = vpop.f32.mrf.mxu2 }
 0x662   :  { %v881_v45 = vpop.f32.mrf.mxu2 }
 0x66a   :  { %v884_v57 = vpop.f32.mrf.mxu2 }
 0x672   :  { %v886_v59 = vpop.f32.mrf.mxu2 }
 0x6c1   :  { %v821_v60 = vpop.f32.mrf.mxu1 }
 0x6c2   :  { %833 = vrot.lane.b32.xlu2 %v821_v60, %s1313_s21 }
 0x6c9   :  { %v823_v48 = vpop.f32.mrf.mxu1 }
 0x6ca   :  { %835 = vrot.lane.b32.xlu0 %v823_v48, %s1313_s21  ;;  %891 = vrot.lane.b32.xlu2 %v879_v49, %s1313_s21 }
 0x6d1   :  { %v826_v62 = vpop.f32.mrf.mxu1 }
 0x6d2   :  { %837 = vrot.lane.b32.xlu1 %v826_v62, %s1313_s21  ;;  %893 = vrot.lane.b32.xlu0 %v881_v45, %s1313_s21 }
 0x6d9   :  { %v828_v63 = vpop.f32.mrf.mxu1 }
 0x6da   :  { %895 = vrot.lane.b32.xlu1 %v884_v57, %s1313_s21  ;;  %s923_s21 = sshll.u32 %s1321_s10, 4  ;;  %s924_s21 = int_to_ptr.vmem [resolvable:$true] %s923_s21 }
 0x71c   :  { %v834_v0 = vpop.permute.xlu2 %833 }
 0x71d   :  { %v842_v2 = vadd.f32 %v834_v0, %v1630_v7 }
 0x724   :  { %v892_v41 = vpop.permute.xlu2 %891 }
 0x725   :  { %v900_v6 = vadd.f32 %v892_v41, %v842_v2 }
 0x727   :  { %906 = vrot.lane.b32.xlu2 %v900_v6, %s1320_s7 }
 0x73c   :  { %v836_v8 = vpop.permute.xlu0 %835 }
 0x73d   :  { %v843_v9 = vadd.f32 %v836_v8, %v1625_v3 }
 0x744   :  { %v838_v12 = vpop.permute.xlu1 %837  ;;  %v894_v13 = vpop.permute.xlu0 %893 }
 0x745   :  { %v901_v14 = vadd.f32 %v894_v13, %v843_v9  ;;  %v844_v15 = vadd.f32 %v838_v12, %v1619_v1 }
 0x747   :  { %908 = vrot.lane.b32.xlu0 %v901_v14, %s1320_s7 }
 0x74c   :  { %v896_v16 = vpop.permute.xlu1 %895 }
 0x74d   :  { %v902_v17 = vadd.f32 %v896_v16, %v844_v15 }
 0x74f   :  { %910 = vrot.lane.b32.xlu1 %v902_v17, %s1320_s7 }
 0x781   :  { %v907_v19 = vpop.permute.xlu2 %906 }
 0x782   :  { %915 = vst.msk [vmem:[#allocation14] sm:$0xff] %vm278_vm2, %v907_v19 }
 0x7b9   :  { %v909_v7 = vpop.permute.xlu0 %908 }
 0x7ba   :  { %916 = vst.msk [vmem:[#allocation14 + $0x8] sm:$0xff] %vm278_vm2, %v909_v7 }
 0x7c1   :  { %v911_v1 = vpop.permute.xlu1 %910 }
 0x7c2   :  { %918 = vst.msk [vmem:[#allocation14 + $0x10] sm:$0x1] %vm917_vm5, %v911_v1 }
 0x7c3   :  { %931 = dma.vmem_to_hbm [thread:$0]  %s924_s21, 384, %s926_s23, [#allocation4], %s1322_s6, %s1322_s6, %s1323_s24  }
 0x7c4   :  { %1306 = dma.done.wait [#allocation4], 384  }
 0x7c5   :  { %1307 = vsyncadd [#allocation4], 4294966912 }
 0x7c6   :  { %936 = vsyncpa [#allocation3], 1 }
 0x7c7   :  { %937 = vsyncpa [#allocation6], 1 }
 0x7c8   :  { %938 = vsyncpa [#allocation9], 1 }
 0x7c9   :  { %939 = vsyncpa [#allocation12], 1 }
 0x7ca   :  { %940 = vsyncpa [#allocation4], 1 }

</bundles_post_ra>
